<compile_context>
chip_gen: v5e
topology: v5e:2x2
jax: 0.10.0
libtpu: 0.0.40
codegen_flags: <defaults>
</compile_context>

<pallas_src>
import jax
import jax.numpy as jnp
from jax.experimental import pallas as pl
from jax.experimental.pallas import tpu as pltpu

LANE = 128
SUBLANE = 8
MAX_CHUNK_ROWS = 1024   # 1024*128*3*4B = 1.5 MiB per grid step (x2 buffers = 3 MiB)


def _ratio_kernel(n_ref, data_ref, loss_ref, acc_ref):
    c = pl.program_id(0)
    nc = pl.num_programs(0)

    @pl.when(c == 0)
    def _():
        acc_ref[...] = jnp.zeros_like(acc_ref)

    n = n_ref[0]                          # int32 true sample count (SMEM)
    event = data_ref[0]                   # (chunk_rows, 128) f32
    time = data_ref[1]                    # (chunk_rows, 128) f32
    pred = data_ref[2]                    # (chunk_rows, 128) f32

    rows = event.shape[0]
    base = c * (rows * LANE)              # flat offset of this chunk
    ridx = jax.lax.broadcasted_iota(jnp.int32, (rows, LANE), 0)
    cidx = jax.lax.broadcasted_iota(jnp.int32, (rows, LANE), 1)
    valid = (base + ridx * LANE + cidx) < n          # drop zero-padded tail

    unc = jnp.logical_and(valid, event == 1.0)       # uncensored
    cen = jnp.logical_and(valid, event == 0.0)       # censored
    chg = jnp.logical_and(cen, pred < time)          # censored preds to push up

    diff = time - pred
    sq = diff * diff

    unc_f = unc.astype(jnp.float32)
    cen_f = cen.astype(jnp.float32)
    chg_f = chg.astype(jnp.float32)

    # Stage 1: sublane-axis partial sums -> (1, 128) lane vectors (VPU adds).
    p_cnt_unc = jnp.sum(unc_f, axis=0, keepdims=True)
    p_sum_unc = jnp.sum(sq * unc_f, axis=0, keepdims=True)
    p_cnt_cen = jnp.sum(cen_f, axis=0, keepdims=True)
    p_cnt_chg = jnp.sum(chg_f, axis=0, keepdims=True)
    p_sum_chg = jnp.sum(sq * chg_f, axis=0, keepdims=True)

    # Stage 2: pack the five partials into rows of one (8, 128) slab and
    # accumulate across grid steps (no cross-lane work inside the loop).
    row = jax.lax.broadcasted_iota(jnp.int32, (SUBLANE, LANE), 0)
    packed = (jnp.where(row == 0, p_cnt_unc, 0.0)
              + jnp.where(row == 1, p_sum_unc, 0.0)
              + jnp.where(row == 2, p_cnt_cen, 0.0)
              + jnp.where(row == 3, p_cnt_chg, 0.0)
              + jnp.where(row == 4, p_sum_chg, 0.0))
    acc_ref[...] += packed

    # Finalize: ONE cross-lane (XLU) reduction for all five quantities.
    @pl.when(c == nc - 1)
    def _():
        totals = jnp.sum(acc_ref[...], axis=1, keepdims=True)   # (8, 1)

        cnt_unc = totals[0, 0]
        sum_unc = totals[1, 0]
        cnt_cen = totals[2, 0]
        cnt_chg = totals[3, 0]
        sum_chg = totals[4, 0]

        # Mean MSE over each (possibly empty) subset; empty subset contributes 0.
        loss_first = jnp.where(cnt_unc > 0.0,
                               sum_unc / jnp.maximum(cnt_unc, 1.0), 0.0)
        loss_second = jnp.where(cnt_chg > 0.0,
                                0.5 * sum_chg / jnp.maximum(cnt_chg, 1.0), 0.0)
        loss = loss_first + loss_second

        nf = n.astype(jnp.float32)
        not_changed = cnt_cen - cnt_chg
        denom = nf - not_changed
        loss = jnp.where(denom != 0.0, loss * nf / denom, loss)

        loss_ref[0, 0] = loss


def ratio_loss_pallas(t_pred, y_true):
    """RATIO loss. t_pred: (N,) or (N,1) predictions; y_true: (N,2) [event, time]."""
    n = y_true.shape[0]

    # Rows of a sublane-dense (rows, 128) layout, rounded up to a multiple of 8.
    rows_min = max(SUBLANE, -(-n // LANE))
    rows_min = -(-rows_min // SUBLANE) * SUBLANE
    chunk_rows = min(rows_min, MAX_CHUNK_ROWS)
    rows = -(-rows_min // chunk_rows) * chunk_rows
    num_chunks = rows // chunk_rows
    n_pad = rows * LANE

    event = y_true[:, 0].astype(jnp.float32)
    time = y_true[:, 1].astype(jnp.float32)
    pred = t_pred.reshape(-1).astype(jnp.float32)

    # One fused slab, one pad, one DMA per chunk.
    data = jnp.stack([event, time, pred], axis=0)            # (3, N)
    data = jnp.pad(data, ((0, 0), (0, n_pad - n)))           # (3, N_pad), zero padding
    data = data.reshape(3, rows, LANE)

    n_arr = jnp.array([n], dtype=jnp.int32)

    out = pl.pallas_call(
        _ratio_kernel,
        out_shape=jax.ShapeDtypeStruct((1, 1), jnp.float32),
        grid=(num_chunks,),
        in_specs=[
            pl.BlockSpec(memory_space=pltpu.MemorySpace.SMEM),            # n (scalar)
            pl.BlockSpec((3, chunk_rows, LANE), lambda c: (0, c, 0)),     # fused data
        ],
        out_specs=pl.BlockSpec(memory_space=pltpu.MemorySpace.SMEM),
        scratch_shapes=[pltpu.VMEM((SUBLANE, LANE), jnp.float32)],
        compiler_params=pltpu.CompilerParams(
            dimension_semantics=("arbitrary",)),
    )(n_arr, data)
    return out[0, 0]


def _ratio_loss_ref(t_pred, y_true):
    """Pure-JAX reference with identical semantics (for sanity check)."""
    event = y_true[:, 0].astype(jnp.float32)
    time = y_true[:, 1].astype(jnp.float32)
    pred = t_pred.reshape(-1).astype(jnp.float32)
    n = float(y_true.shape[0])

    unc = event == 1.0
    cen = event == 0.0
    sq = (time - pred) ** 2

    cnt_unc = jnp.sum(unc)
    loss_first = jnp.where(cnt_unc > 0,
                           jnp.sum(jnp.where(unc, sq, 0.0)) / jnp.maximum(cnt_unc, 1),
                           0.0)
    chg = cen & (pred < time)
    cnt_chg = jnp.sum(chg)
    loss_second = jnp.where(cnt_chg > 0,
                            0.5 * jnp.sum(jnp.where(chg, sq, 0.0)) / jnp.maximum(cnt_chg, 1),
                            0.0)
    loss = loss_first + loss_second
    not_changed = jnp.sum(cen) - cnt_chg
    denom = n - not_changed
    return jnp.where(denom != 0, loss * n / denom, loss)


if __name__ == "__main__":
    key = jax.random.PRNGKey(0)
    k1, k2, k3 = jax.random.split(key, 3)

    N = 8
    # y_true: column 0 = event indicator (1 uncensored / 0 censored), column 1 = time
    event = (jax.random.uniform(k1, (N,)) > 0.5).astype(jnp.float32)
    time = jax.random.uniform(k2, (N,), minval=0.5, maxval=10.0)
    y_true = jnp.stack([event, time], axis=1)                         # (8, 2)
    t_pred = jax.random.uniform(k3, (N, 1), minval=0.0, maxval=10.0)  # (8, 1)

    loss = ratio_loss_pallas(t_pred, y_true)
    loss = jax.block_until_ready(loss)

    ref = _ratio_loss_ref(t_pred, y_true)
    assert jnp.allclose(loss, ref, rtol=1e-5, atol=1e-5), (loss, ref)

    print("KERNEL_OK")
</pallas_src>

<mosaic_0001>
module attributes {stable_mosaic.version = 11 : i64} {
  func.func @_ratio_kernel(%arg0: i32, %arg1: memref<1xi32, #tpu.memory_space<smem>>, %arg2: memref<3x8x128xf32, #tpu.memory_space<vmem>>, %arg3: memref<1x1xf32, #tpu.memory_space<smem>>, %arg4: memref<8x128xf32, #tpu.memory_space<vmem>>) attributes {dimension_semantics = [#tpu.dimension_semantics<arbitrary>], iteration_bounds = array<i64: 1>, scalar_prefetch = 0 : i64, scratch_operands = 1 : i64, tpu.core_type = #tpu.core_type<tc>, window_params = [{transform_indices = @transform_0, window_bounds = array<i64: 1>}, {transform_indices = @transform_1, window_bounds = array<i64: 3, 8, 128>}, {transform_indices = @transform_2, window_bounds = array<i64: 1, 1>}]} {
    %c0_i32 = arith.constant 0 : i32
    %0 = arith.cmpi eq, %arg0, %c0_i32 : i32
    %1 = arith.extui %0 : i1 to i32
    %c0_i32_0 = arith.constant 0 : i32
    %2 = arith.cmpi ne, %1, %c0_i32_0 : i32
    scf.if %2 {
      %cst_26 = arith.constant 0.000000e+00 : f32
      %89 = vector.broadcast %cst_26 : f32 to vector<8x128xf32>
      %c0_27 = arith.constant 0 : index
      %c0_28 = arith.constant 0 : index
      %90 = vector.load %arg4[%c0_27, %c0_28] : memref<8x128xf32, #tpu.memory_space<vmem>>, vector<8x128xf32>
      tpu.vector_store %arg4[%c0_27, %c0_28], %89 {strides = array<i32>} : memref<8x128xf32, #tpu.memory_space<vmem>>, vector<8x128xf32>,
    } else {
    }
    %c0 = arith.constant 0 : index
    %3 = memref.load %arg1[%c0] : memref<1xi32, #tpu.memory_space<smem>>
    %c0_1 = arith.constant 0 : index
    %c0_2 = arith.constant 0 : index
    %c0_3 = arith.constant 0 : index
    %4 = vector.load %arg2[%c0_1, %c0_2, %c0_3] : memref<3x8x128xf32, #tpu.memory_space<vmem>>, vector<1x8x128xf32>
    %5 = vector.shape_cast %4 : vector<1x8x128xf32> to vector<8x128xf32>
    %c1 = arith.constant 1 : index
    %c0_4 = arith.constant 0 : index
    %c0_5 = arith.constant 0 : index
    %6 = vector.load %arg2[%c1, %c0_4, %c0_5] : memref<3x8x128xf32, #tpu.memory_space<vmem>>, vector<1x8x128xf32>
    %7 = vector.shape_cast %6 : vector<1x8x128xf32> to vector<8x128xf32>
    %c2 = arith.constant 2 : index
    %c0_6 = arith.constant 0 : index
    %c0_7 = arith.constant 0 : index
    %8 = vector.load %arg2[%c2, %c0_6, %c0_7] : memref<3x8x128xf32, #tpu.memory_space<vmem>>, vector<1x8x128xf32>
    %9 = vector.shape_cast %8 : vector<1x8x128xf32> to vector<8x128xf32>
    %c1024_i32 = arith.constant 1024 : i32
    %10 = arith.muli %arg0, %c1024_i32 : i32
    %11 = tpu.iota {dimensions = array<i32: 0>} : vector<8x128xi32>
    %12 = tpu.iota {dimensions = array<i32: 1>} : vector<8x128xi32>
    %c128_i32 = arith.constant 128 : i32
    %13 = vector.broadcast %c128_i32 : i32 to vector<8x128xi32>
    %14 = arith.muli %11, %13 : vector<8x128xi32>
    %15 = vector.broadcast %10 : i32 to vector<8x128xi32>
    %16 = arith.addi %15, %14 : vector<8x128xi32>
    %17 = arith.addi %16, %12 : vector<8x128xi32>
    %18 = vector.broadcast %3 : i32 to vector<8x128xi32>
    %19 = arith.cmpi slt, %17, %18 : vector<8x128xi32>
    %cst = arith.constant 1.000000e+00 : f32
    %20 = vector.broadcast %cst : f32 to vector<8x128xf32>
    %21 = arith.cmpf oeq, %5, %20 : vector<8x128xf32>
    %22 = arith.andi %19, %21 : vector<8x128xi1>
    %cst_8 = arith.constant 0.000000e+00 : f32
    %23 = vector.broadcast %cst_8 : f32 to vector<8x128xf32>
    %24 = arith.cmpf oeq, %5, %23 : vector<8x128xf32>
    %25 = arith.andi %19, %24 : vector<8x128xi1>
    %26 = arith.cmpf olt, %9, %7 : vector<8x128xf32>
    %27 = arith.andi %25, %26 : vector<8x128xi1>
    %28 = arith.subf %7, %9 : vector<8x128xf32>
    %29 = arith.mulf %28, %28 : vector<8x128xf32>
    %30 = arith.extui %22 : vector<8x128xi1> to vector<8x128xi32>
    %31 = arith.sitofp %30 : vector<8x128xi32> to vector<8x128xf32>
    %32 = arith.extui %25 : vector<8x128xi1> to vector<8x128xi32>
    %33 = arith.sitofp %32 : vector<8x128xi32> to vector<8x128xf32>
    %34 = arith.extui %27 : vector<8x128xi1> to vector<8x128xi32>
    %35 = arith.sitofp %34 : vector<8x128xi32> to vector<8x128xf32>
    %cst_9 = arith.constant dense<0.000000e+00> : vector<128xf32>
    %36 = vector.multi_reduction <add>, %31, %cst_9 [0] : vector<8x128xf32> to vector<128xf32>
    %37 = vector.shape_cast %36 : vector<128xf32> to vector<1x128xf32>
    %38 = arith.mulf %29, %31 : vector<8x128xf32>
    %cst_10 = arith.constant dense<0.000000e+00> : vector<128xf32>
    %39 = vector.multi_reduction <add>, %38, %cst_10 [0] : vector<8x128xf32> to vector<128xf32>
    %40 = vector.shape_cast %39 : vector<128xf32> to vector<1x128xf32>
    %cst_11 = arith.constant dense<0.000000e+00> : vector<128xf32>
    %41 = vector.multi_reduction <add>, %33, %cst_11 [0] : vector<8x128xf32> to vector<128xf32>
    %42 = vector.shape_cast %41 : vector<128xf32> to vector<1x128xf32>
    %cst_12 = arith.constant dense<0.000000e+00> : vector<128xf32>
    %43 = vector.multi_reduction <add>, %35, %cst_12 [0] : vector<8x128xf32> to vector<128xf32>
    %44 = vector.shape_cast %43 : vector<128xf32> to vector<1x128xf32>
    %45 = arith.mulf %29, %35 : vector<8x128xf32>
    %cst_13 = arith.constant dense<0.000000e+00> : vector<128xf32>
    %46 = vector.multi_reduction <add>, %45, %cst_13 [0] : vector<8x128xf32> to vector<128xf32>
    %47 = vector.shape_cast %46 : vector<128xf32> to vector<1x128xf32>
    %48 = tpu.iota {dimensions = array<i32: 0>} : vector<8x128xi32>
    %c0_i32_14 = arith.constant 0 : i32
    %49 = vector.broadcast %c0_i32_14 : i32 to vector<8x128xi32>
    %50 = arith.cmpi eq, %48, %49 : vector<8x128xi32>
    %cst_15 = arith.constant 0.000000e+00 : f32
    %51 = vector.shape_cast %37 : vector<1x128xf32> to vector<1x128xf32>
    %52 = vector.broadcast %51 : vector<1x128xf32> to vector<8x128xf32>
    %53 = vector.broadcast %cst_15 : f32 to vector<8x128xf32>
    %54 = arith.select %50, %52, %53 : vector<8x128xi1>, vector<8x128xf32>
    %c1_i32 = arith.constant 1 : i32
    %55 = vector.broadcast %c1_i32 : i32 to vector<8x128xi32>
    %56 = arith.cmpi eq, %48, %55 : vector<8x128xi32>
    %cst_16 = arith.constant 0.000000e+00 : f32
    %57 = vector.shape_cast %40 : vector<1x128xf32> to vector<1x128xf32>
    %58 = vector.broadcast %57 : vector<1x128xf32> to vector<8x128xf32>
    %59 = vector.broadcast %cst_16 : f32 to vector<8x128xf32>
    %60 = arith.select %56, %58, %59 : vector<8x128xi1>, vector<8x128xf32>
    %61 = arith.addf %54, %60 : vector<8x128xf32>
    %c2_i32 = arith.constant 2 : i32
    %62 = vector.broadcast %c2_i32 : i32 to vector<8x128xi32>
    %63 = arith.cmpi eq, %48, %62 : vector<8x128xi32>
    %cst_17 = arith.constant 0.000000e+00 : f32
    %64 = vector.shape_cast %42 : vector<1x128xf32> to vector<1x128xf32>
    %65 = vector.broadcast %64 : vector<1x128xf32> to vector<8x128xf32>
    %66 = vector.broadcast %cst_17 : f32 to vector<8x128xf32>
    %67 = arith.select %63, %65, %66 : vector<8x128xi1>, vector<8x128xf32>
    %68 = arith.addf %61, %67 : vector<8x128xf32>
    %c3_i32 = arith.constant 3 : i32
    %69 = vector.broadcast %c3_i32 : i32 to vector<8x128xi32>
    %70 = arith.cmpi eq, %48, %69 : vector<8x128xi32>
    %cst_18 = arith.constant 0.000000e+00 : f32
    %71 = vector.shape_cast %44 : vector<1x128xf32> to vector<1x128xf32>
    %72 = vector.broadcast %71 : vector<1x128xf32> to vector<8x128xf32>
    %73 = vector.broadcast %cst_18 : f32 to vector<8x128xf32>
    %74 = arith.select %70, %72, %73 : vector<8x128xi1>, vector<8x128xf32>
    %75 = arith.addf %68, %74 : vector<8x128xf32>
    %c4_i32 = arith.constant 4 : i32
    %76 = vector.broadcast %c4_i32 : i32 to vector<8x128xi32>
    %77 = arith.cmpi eq, %48, %76 : vector<8x128xi32>
    %cst_19 = arith.constant 0.000000e+00 : f32
    %78 = vector.shape_cast %47 : vector<1x128xf32> to vector<1x128xf32>
    %79 = vector.broadcast %78 : vector<1x128xf32> to vector<8x128xf32>
    %80 = vector.broadcast %cst_19 : f32 to vector<8x128xf32>
    %81 = arith.select %77, %79, %80 : vector<8x128xi1>, vector<8x128xf32>
    %82 = arith.addf %75, %81 : vector<8x128xf32>
    %c0_20 = arith.constant 0 : index
    %c0_21 = arith.constant 0 : index
    %83 = vector.load %arg4[%c0_20, %c0_21] : memref<8x128xf32, #tpu.memory_space<vmem>>, vector<8x128xf32>
    %84 = arith.addf %83, %82 : vector<8x128xf32>
    %c0_22 = arith.constant 0 : index
    %c0_23 = arith.constant 0 : index
    %85 = vector.load %arg4[%c0_22, %c0_23] : memref<8x128xf32, #tpu.memory_space<vmem>>, vector<8x128xf32>
    tpu.vector_store %arg4[%c0_22, %c0_23], %84 {strides = array<i32>} : memref<8x128xf32, #tpu.memory_space<vmem>>, vector<8x128xf32>,
    %c0_i32_24 = arith.constant 0 : i32
    %86 = arith.cmpi eq, %arg0, %c0_i32_24 : i32
    %87 = arith.extui %86 : i1 to i32
    %c0_i32_25 = arith.constant 0 : i32
    %88 = arith.cmpi ne, %87, %c0_i32_25 : i32
    scf.if %88 {
      %c0_26 = arith.constant 0 : index
      %c0_27 = arith.constant 0 : index
      %89 = vector.load %arg4[%c0_26, %c0_27] : memref<8x128xf32, #tpu.memory_space<vmem>>, vector<8x128xf32>
      %cst_28 = arith.constant dense<0.000000e+00> : vector<8xf32>
      %90 = vector.multi_reduction <add>, %89, %cst_28 [1] : vector<8x128xf32> to vector<8xf32>
      %91 = vector.shape_cast %90 : vector<8xf32> to vector<8x1xf32>
      %92 = vector.extract_strided_slice %91 {offsets = [0, 0], sizes = [1, 1], strides = [1, 1]} : vector<8x1xf32> to vector<1x1xf32>
      %93 = vector.extract %92[0, 0] : f32 from vector<1x1xf32>
      %94 = vector.extract_strided_slice %91 {offsets = [1, 0], sizes = [1, 1], strides = [1, 1]} : vector<8x1xf32> to vector<1x1xf32>
      %95 = vector.extract %94[0, 0] : f32 from vector<1x1xf32>
      %96 = vector.extract_strided_slice %91 {offsets = [2, 0], sizes = [1, 1], strides = [1, 1]} : vector<8x1xf32> to vector<1x1xf32>
      %97 = vector.extract %96[0, 0] : f32 from vector<1x1xf32>
      %98 = vector.extract_strided_slice %91 {offsets = [3, 0], sizes = [1, 1], strides = [1, 1]} : vector<8x1xf32> to vector<1x1xf32>
      %99 = vector.extract %98[0, 0] : f32 from vector<1x1xf32>
      %100 = vector.extract_strided_slice %91 {offsets = [4, 0], sizes = [1, 1], strides = [1, 1]} : vector<8x1xf32> to vector<1x1xf32>
      %101 = vector.extract %100[0, 0] : f32 from vector<1x1xf32>
      %cst_29 = arith.constant 0.000000e+00 : f32
      %102 = arith.cmpf ogt, %93, %cst_29 : f32
      %cst_30 = arith.constant 1.000000e+00 : f32
      %103 = arith.maximumf %93, %cst_30 : f32
      %104 = arith.divf %95, %103 : f32
      %cst_31 = arith.constant 0.000000e+00 : f32
      %105 = arith.select %102, %104, %cst_31 : f32
      %cst_32 = arith.constant 0.000000e+00 : f32
      %106 = arith.cmpf ogt, %99, %cst_32 : f32
      %cst_33 = arith.constant 5.000000e-01 : f32
      %107 = arith.mulf %cst_33, %101 : f32
      %cst_34 = arith.constant 1.000000e+00 : f32
      %108 = arith.maximumf %99, %cst_34 : f32
      %109 = arith.divf %107, %108 : f32
      %cst_35 = arith.constant 0.000000e+00 : f32
      %110 = arith.select %106, %109, %cst_35 : f32
      %111 = arith.addf %105, %110 : f32
      %112 = arith.sitofp %3 : i32 to f32
      %113 = arith.subf %97, %99 : f32
      %114 = arith.subf %112, %113 : f32
      %cst_36 = arith.constant 0.000000e+00 : f32
      %115 = arith.cmpf one, %114, %cst_36 : f32
      %116 = arith.mulf %111, %112 : f32
      %117 = arith.divf %116, %114 : f32
      %118 = arith.select %115, %117, %111 : f32
      %c0_37 = arith.constant 0 : index
      %c0_38 = arith.constant 0 : index
      %119 = memref.load %arg3[%c0_37, %c0_38] : memref<1x1xf32, #tpu.memory_space<smem>>
      memref.store %118, %arg3[%c0_37, %c0_38] : memref<1x1xf32, #tpu.memory_space<smem>>
    } else {
    }
    return
  }
  func.func @transform_0(%arg0: i32) -> i32 {
    %c0_i32 = arith.constant 0 : i32
    %c0_i32_0 = arith.constant 0 : i32
    return %c0_i32 : i32
  }
  func.func @transform_1(%arg0: i32) -> (i32, i32, i32) {
    %c0_i32 = arith.constant 0 : i32
    %c0_i32_0 = arith.constant 0 : i32
    %c0_i32_1 = arith.constant 0 : i32
    return %c0_i32, %arg0, %c0_i32_0 : i32, i32, i32
  }
  func.func @transform_2(%arg0: i32) -> (i32, i32) {
    %c0_i32 = arith.constant 0 : i32
    %c0_i32_0 = arith.constant 0 : i32
    %c0_i32_1 = arith.constant 0 : i32
    return %c0_i32, %c0_i32_0 : i32, i32
  }
}

</mosaic_0001>

<bundles_post_ra>
// kernel: tpu_custom_call.1
= control target key start
LH: loop header
LB: loop body
LE: loop exit
PB: predicated region body
PF: predicated region fallthrough
CT: control target
= control target key end

     0   :  { %8 = vsyncpa [#allocation5], 0  ;;  %s348_s0 = inlined_call_operand.<no memory space> [shape: s32[1], index: 0, kind: input, shape index: {}]   ;;  %s349_s1 = inlined_call_operand.hbm [shape: f32[3,8,128], index: 1, kind: input, shape index: {}]   ;;  %s350_s2 = inlined_call_operand.hbm [shape: f32[1,1], index: 2, kind: output, shape index: {}]  }
   0x1   :  { %9 = vsyncpa [#allocation6], 0  ;;  %s16_s11 = sshll.u32 %s349_s1, 4  ;;  %s283_s12 = smov [#allocation4]   ;;  %s17_s11 = int_to_ptr.hbm [resolvable:$true] %s16_s11 }
   0x2   :  { %s18_s13 = sshll.u32 %s283_s12, 4  ;;  %s284_s14 = smov 128   ;;  %s19_s13 = int_to_ptr.vmem [resolvable:$true] %s18_s13 }
   0x3   :  { %s285_s15 = smov 8  }
   0x4   :  { %24 = dma.hbm_to_vmem [thread:$0]  %s17_s11, 384, %s19_s13, [#allocation5], %s284_s14, %s284_s14, %s285_s15  }
   0x5   :  { %279 = dma.done.wait [#allocation5], 384  }
   0x6   :  { %280 = vsyncadd [#allocation5], 4294966912  ;;  %v41_v0 = vlaneseq  ;;  %v49_v4 = vstv %s348_s0  ;;  %v35_v6 = vld [vmem:[#allocation4] sm:$0xff]  ;;  %v37_v7 = vld [vmem:[#allocation4 + $0x8] sm:$0xff]  ;;  %v286_v10 = vmov 0.0   ;;  %s287_s18 = smov 1.0   ;;  %s171_s25 = scvt.s32.f32 %s348_s0 }
   0x7   :  { %v39_v8 = vld [vmem:[#allocation4 + $0x10] sm:$0xff]  ;;  %vm51_vm1 = vcmp.eq.f32.partialorder %v35_v6, 1.0  ;;  %vm53_vm2 = vcmp.eq.f32.partialorder %v35_v6, 0.0  ;;  %s201_s15 = sshll.u32 %s350_s2, 4  ;;  %s202_s15 = int_to_ptr.hbm [resolvable:$true] %s201_s15 }
   0x8   :  { %v307_v1 = vshrl.u32 %v41_v0, 7  ;;  %v44_v2 = vand.u32 127, %v41_v0  ;;  %vm55_vm3 = vcmp.lt.f32.partialorder %v39_v8, %v37_v7  ;;  %v57_v9 = vsub.f32 %v37_v7, %v39_v8 }
   0xa   :  { %v45_v3 = vmul.u32 128, %v307_v1  ;;  %v58_v12 = vmul.f32 %v57_v9, %v57_v9  ;;  %vm97_vm7 = vcmp.eq.s32.totalorder %v307_v1, 0  ;;  %vm99_vm8 = vcmp.eq.s32.totalorder %v307_v1, 1 }
   0xb   :  { %vm102_vm9 = vcmp.eq.s32.totalorder %v307_v1, 2  ;;  %vm105_vm10 = vcmp.eq.s32.totalorder %v307_v1, 3  ;;  %vm108_vm11 = vcmp.eq.s32.totalorder %v307_v1, 4 }
   0xc   :  { %v48_v5 = vadd.s32 %v45_v3, %v44_v2 }
   0xe   :  { %vm50_vm0 = vcmp.lt.s32.totalorder %v48_v5, %v49_v4 }
   0xf   :  { %vm52_vm4 = vmand %vm50_vm0, %vm51_vm1 }
  0x10   :  { %vm54_vm5 = vmand %vm50_vm0, %vm53_vm2  ;;  %v212_v11 = vsel %vm52_vm4, 1.0, %v286_v10 }
  0x11   :  { %vm56_vm6 = vmand %vm54_vm5, %vm55_vm3  ;;  %v213_v13 = vsel %vm54_vm5, 1.0, %v286_v10  ;;  %v65_v14 = vrot.slane %v212_v11, 4  ;;  %v71_v18 = vmul.f32 %v212_v11, %v58_v12 }
  0x12   :  { %v214_v15 = vsel %vm56_vm6, 1.0, %v286_v10  ;;  %v78_v16 = vrot.slane %v213_v13, 4 }
  0x13   :  { %v66_v17 = vadd.f32 %v212_v11, %v65_v14  ;;  %v84_v19 = vrot.slane %v214_v15, 4  ;;  %v90_v20 = vmul.f32 %v214_v15, %v58_v12  ;;  %v72_v23 = vrot.slane %v71_v18, 4 }
  0x14   :  { %v79_v21 = vadd.f32 %v213_v13, %v78_v16 }
  0x15   :  { %v67_v22 = vrot.slane %v66_v17, 2  ;;  %v85_v24 = vadd.f32 %v214_v15, %v84_v19  ;;  %v91_v25 = vrot.slane %v90_v20, 4  ;;  %v73_v28 = vadd.f32 %v72_v23, %v71_v18 }
  0x16   :  { %v80_v26 = vrot.slane %v79_v21, 2 }
  0x17   :  { %v68_v27 = vadd.f32 %v67_v22, %v66_v17  ;;  %v86_v29 = vrot.slane %v85_v24, 2  ;;  %v92_v30 = vadd.f32 %v91_v25, %v90_v20  ;;  %v74_v33 = vrot.slane %v73_v28, 2 }
  0x18   :  { %v81_v31 = vadd.f32 %v80_v26, %v79_v21 }
  0x19   :  { %v69_v32 = vrot.slane %v68_v27, 1  ;;  %v87_v34 = vadd.f32 %v86_v29, %v85_v24  ;;  %v93_v35 = vrot.slane %v92_v30, 2  ;;  %v75_v38 = vadd.f32 %v74_v33, %v73_v28 }
  0x1a   :  { %v82_v36 = vrot.slane %v81_v31, 1 }
  0x1b   :  { %v70_v37 = vadd.f32 %v69_v32, %v68_v27  ;;  %v88_v39 = vrot.slane %v87_v34, 1  ;;  %v94_v40 = vadd.f32 %v93_v35, %v92_v30  ;;  %v76_v41 = vrot.slane %v75_v38, 1 }
  0x1c   :  { %v83_v42 = vadd.f32 %v82_v36, %v81_v31 }
  0x1d   :  { %v95_v43 = vrot.slane %v94_v40, 1  ;;  %v77_v44 = vadd.f32 %v76_v41, %v75_v38  ;;  %v89_v45 = vadd.f32 %v88_v39, %v87_v34  ;;  %v98_v46 = vsel %vm97_vm7, %v70_v37, 0.0 }
  0x1e   :  { %v103_v49 = vsel %vm102_vm9, %v83_v42, 0.0 }
  0x1f   :  { %v96_v47 = vadd.f32 %v95_v43, %v94_v40  ;;  %v100_v48 = vsel %vm99_vm8, %v77_v44, 0.0  ;;  %v106_v51 = vsel %vm105_vm10, %v89_v45, 0.0 }
  0x20   :  { %v101_v50 = vadd.f32 %v100_v48, %v98_v46 }
  0x21   :  { %v109_v53 = vsel %vm108_vm11, %v96_v47, 0.0 }
  0x22   :  { %v104_v52 = vadd.f32 %v103_v49, %v101_v50 }
  0x24   :  { %v107_v54 = vadd.f32 %v106_v51, %v104_v52 }
  0x26   :  { %v110_v55 = vadd.f32 %v109_v53, %v107_v54 }
  0x28   :  { %118 = vadd.xlane.f32.xlu0 %v110_v55 }
  0x9b   :  { %v119_v56 = vpop.xlane.xlu0 %118 }
  0x9c   :  { %215 = vpush %v119_v56  ;;  %v121_v57 = vrot.slane %v119_v56, 1  ;;  %v123_v58 = vrot.slane %v119_v56, 2  ;;  %v125_v59 = vrot.slane %v119_v56, 3  ;;  %v127_v60 = vrot.slane %v119_v56, 4 }
  0x9e   :  { %217 = vpush %v121_v57 }
  0x9f   :  { %219 = vpush %v123_v58 }
  0xa0   :  { %221 = vpush %v125_v59 }
  0xa1   :  { %223 = vpush %v127_v60 }
  0xcd   :  { %s318_s1 = spop %215 }
  0xce   :  { %s130_s19 = smax.f32 %s287_s18, %s318_s1  ;;  %p129_p0 = scmp.gt.f32.partialorder %s318_s1, 0.0 }
  0xcf   :  { %v131_v61 = vstv %s130_s19  ;;  %s321_s20 = spop %217  ;;  %s288_s1 = smov [#allocation7]  }
  0xd0   :  { %237 = vrcp.f32 %v131_v61  ;;  %s220_s21 = spop %219  ;;  %v141_v4 = vand.u32 2147483647, %v131_v61  ;;  %v143_v5 = vand.u32 2147483648, %v131_v61  ;;  %vm137_vm13 = vweird.f32 %v131_v61 }
  0xd1   :  { %s323_s22 = spop %221 }
  0xd2   :  { %s151_s26 = smax.f32 %s287_s18, %s323_s22  ;;  %s172_s27 = ssub.f32 %s220_s21, %s323_s22  ;;  %vm142_vm15 = vcmp.eq.f32.partialorder %v141_v4, 8.507059e+37  ;;  %v144_v11 = vor.u32 1.1754944e-38, %v143_v5 }
  0xd3   :  { %v152_v62 = vstv %s151_s26  ;;  %s224_s3 = spop %223  ;;  %p149_p1 = scmp.gt.f32.partialorder %s323_s22, 0.0 }
  0xd4   :  { %239 = vrcp.f32 %v152_v62  ;;  %s334_s30 = ssub.f32 %s171_s25, %s172_s27  ;;  %v162_v12 = vand.u32 2147483647, %v152_v62  ;;  %v164_v13 = vand.u32 2147483648, %v152_v62  ;;  %vm158_vm1 = vweird.f32 %v152_v62  ;;  %s150_s6 = smul.f32 0.5, %s224_s3 }
  0xd6   :  { %v238_v63 = vpop.eup %237  ;;  %v176_v1 = vstv %s334_s30  ;;  %vm163_vm3 = vcmp.eq.f32.partialorder %v162_v12, 8.507059e+37  ;;  %v165_v20 = vor.u32 1.1754944e-38, %v164_v13  ;;  %p174_p2 = scmp.ne.f32.partialorder %s334_s30, 0.0 }
  0xd7   :  { %v133_v0 = vmul.f32 %v238_v63, %v131_v61  ;;  %241 = vrcp.f32 %v176_v1  ;;  %vm138_vm12 = vweird.f32 %v238_v63  ;;  %v188_v21 = vand.u32 2147483648, %v176_v1 }
  0xd8   :  { %vm139_vm14 = vmor %vm137_vm13, %vm138_vm12  ;;  %v186_v24 = vand.u32 2147483647, %v176_v1  ;;  %vm182_vm5 = vweird.f32 %v176_v1 }
  0xd9   :  { %v134_v2 = vsub.f32 1.0, %v133_v0  ;;  %v189_v27 = vor.u32 1.1754944e-38, %v188_v21 }
  0xda   :  { %v240_v3 = vpop.eup %239  ;;  %vm187_vm7 = vcmp.eq.f32.partialorder %v186_v24, 8.507059e+37 }
  0xdb   :  { %v154_v6 = vmul.f32 %v240_v3, %v152_v62  ;;  %v135_v7 = vmul.f32 %v238_v63, %v134_v2  ;;  %vm159_vm0 = vweird.f32 %v240_v3 }
  0xdc   :  { %vm160_vm2 = vmor %vm158_vm1, %vm159_vm0 }
  0xdd   :  { %v155_v8 = vsub.f32 1.0, %v154_v6  ;;  %v136_v9 = vadd.f32 %v238_v63, %v135_v7  ;;  %v242_v10 = vpop.eup %241 }
  0xde   :  { %v178_v16 = vmul.f32 %v242_v10, %v176_v1  ;;  %vm183_vm4 = vweird.f32 %v242_v10 }
  0xdf   :  { %v140_v14 = vsel %vm139_vm14, %v238_v63, %v136_v9  ;;  %v156_v15 = vmul.f32 %v240_v3, %v155_v8  ;;  %vm184_vm6 = vmor %vm182_vm5, %vm183_vm4 }
  0xe0   :  { %v145_v17 = vsel %vm142_vm15, %v144_v11, %v140_v14  ;;  %v179_v19 = vsub.f32 1.0, %v178_v16 }
  0xe1   :  { %225 = vpush %v145_v17  ;;  %v157_v18 = vadd.f32 %v240_v3, %v156_v15 }
  0xe2   :  { %v180_v23 = vmul.f32 %v242_v10, %v179_v19 }
  0xe3   :  { %v161_v22 = vsel %vm160_vm2, %v240_v3, %v157_v18 }
  0xe4   :  { %v166_v25 = vsel %vm163_vm3, %v165_v20, %v161_v22  ;;  %v181_v26 = vadd.f32 %v242_v10, %v180_v23 }
  0xe5   :  { %227 = vpush %v166_v25 }
  0xe6   :  { %v185_v28 = vsel %vm184_vm6, %v242_v10, %v181_v26 }
  0xe7   :  { %v190_v29 = vsel %vm187_vm7, %v189_v27, %v185_v28 }
  0xe8   :  { %229 = vpush %v190_v29 }
 0x112   :  { %s226_s4 = spop %225 }
 0x113   :  { %s147_s5 = smul.f32 %s226_s4, %s321_s20 }
 0x115   :  { %s352_s5 = smov (!%p129_p0, %s147_s5), 0.0 }
 0x116   :  { %s228_s7 = spop %227 }
 0x117   :  { %s168_s8 = smul.f32 %s228_s7, %s150_s6 }
 0x119   :  { %s354_s8 = smov (!%p149_p1, %s168_s8), 0.0  ;;  %s230_s16 = spop %229 }
 0x11a   :  { %s170_s9 = sadd.f32 %s354_s8, %s352_s5 }
 0x11c   :  { %s175_s12 = smul.f32 %s171_s25, %s170_s9 }
 0x11e   :  { %s192_s17 = smul.f32 %s230_s16, %s175_s12 }
 0x120   :  { %s356_s17 = smov (!%p174_p2, %s192_s17), %s170_s9 }
 0x121   :  { %195 = sst [smem:[#allocation7]] %s356_s17 }
 0x122   :  { %204 = dma.smem_to_hbm %s288_s1, 16, %s202_s15, [#allocation6]  }
 0x123   :  { %281 = dma.done.wait [#allocation6], 16  }
 0x124   :  { %282 = vsyncadd [#allocation6], 4294967280 }
 0x125   :  { %209 = sfence }
 0x126   :  { %210 = vsyncpa [#allocation5], 1 }
 0x127   :  { %211 = vsyncpa [#allocation6], 1 }

</bundles_post_ra>
